<compile_context>
chip_gen: v7x
topology: tpu7x:2x2x1
jax: 0.10.0
libtpu: 0.0.40
codegen_flags: <defaults>
</compile_context>

<pallas_src>
import math
from functools import partial

import jax
import jax.numpy as jnp
from jax import lax
from jax.experimental import pallas as pl
from jax.experimental.pallas import tpu as pltpu

# Above every default scoped-VMEM limit (16/32 MiB), below v7x's 64 MiB part.
_VMEM_LIMIT = 48 * 1024 * 1024


def _pick_tile(n, target, mult=8):
    """Largest divisor of n that is <= target and a multiple of `mult`; else n."""
    if n <= target:
        return n
    t = (target // mult) * mult
    while t >= mult:
        if n % t == 0:
            return t
        t -= mult
    return n


# ----------------------------------------------------------------------------
# Parameter preparation: done ONCE at setup time, not inside every forward.
#   * concat wq/wk/wv -> (H, 3H), bq/bk/bv -> (1, 3H)
#   * fold the 1/sqrt(head_dim) softmax scale into the Q weight/bias
#   * cast the fused weight to the bf16 compute dtype (bias stays f32: it is
#     added to the f32 MXU accumulator)
# ----------------------------------------------------------------------------
def prepare_qkv_params(params, num_heads, compute_dtype=jnp.bfloat16):
    H = params["wq"].shape[0]
    head_dim = H // num_heads
    scale = 1.0 / math.sqrt(head_dim)
    w_qkv = jnp.concatenate(
        [params["wq"] * scale, params["wk"], params["wv"]], axis=1)
    b_qkv = jnp.concatenate(
        [params["bq"] * scale, params["bk"], params["bv"]], axis=1)
    return w_qkv.astype(compute_dtype), b_qkv.astype(jnp.float32)


# ----------------------------------------------------------------------------
# Kernel 1: fused Q/K/V linear projection.
#   x:(1, ts, H) bf16 @ w_qkv:(H, 3H) bf16 -> f32 accum + f32 bias
#   -> q/k/v blocks (1, ts, H) in bf16.
# ----------------------------------------------------------------------------
def qkv_proj_kernel(x_ref, w_ref, b_ref, q_ref, k_ref, v_ref, *, hidden):
    y = jnp.dot(x_ref[0], w_ref[...], preferred_element_type=jnp.float32)
    y = y + b_ref[...]
    q_ref[0] = y[:, :hidden].astype(q_ref.dtype)
    k_ref[0] = y[:, hidden:2 * hidden].astype(k_ref.dtype)
    v_ref[0] = y[:, 2 * hidden:].astype(v_ref.dtype)


def qkv_projection(x, w_qkv, b_qkv, *, seq_block=512):
    B, S, H = x.shape
    ts = _pick_tile(S, seq_block)
    grid = (B, S // ts)

    itemsize = jnp.dtype(x.dtype).itemsize
    cost = pl.CostEstimate(
        flops=2 * B * S * H * 3 * H,
        transcendentals=0,
        bytes_accessed=(B * S * H * itemsize            # x
                        + 3 * H * H * itemsize          # fused weight
                        + 3 * H * 4                     # fused bias (f32)
                        + 3 * B * S * H * itemsize))    # q, k, v out

    x_spec = pl.BlockSpec((1, ts, H), lambda b, s: (b, s, 0))
    w_spec = pl.BlockSpec((H, 3 * H), lambda b, s: (0, 0))   # grid-invariant
    b_spec = pl.BlockSpec((1, 3 * H), lambda b, s: (0, 0))
    o_spec = pl.BlockSpec((1, ts, H), lambda b, s: (b, s, 0))
    out_sd = jax.ShapeDtypeStruct((B, S, H), x.dtype)

    return pl.pallas_call(
        partial(qkv_proj_kernel, hidden=H),
        out_shape=(out_sd, out_sd, out_sd),
        grid_spec=pltpu.PrefetchScalarGridSpec(
            num_scalar_prefetch=0,
            grid=grid,
            in_specs=[x_spec, w_spec, b_spec],
            out_specs=[o_spec, o_spec, o_spec],
        ),
        compiler_params=pltpu.CompilerParams(
            dimension_semantics=("parallel", "parallel"),
            vmem_limit_bytes=_VMEM_LIMIT),
        cost_estimate=cost,
    )(x, w_qkv, b_qkv)


# ----------------------------------------------------------------------------
# Kernel 2: flash attention over (batch, head-group, q-tile, kv-tile) grid.
# Q/K/V blocks are (1, tq/tk, G*hd) column slices of the (B, S, H) projections;
# output block is a lane-dense (1, tq, G*hd) column slice of the (B, S, H)
# context. Per-head accumulators (m, l, acc) and pre-split Q slabs live in VMEM
# scratch with the head on the LEADING axis, so the kv loop does full-slab
# reads/writes only (no lane-offset RMW); the packed lane layout is written
# exactly once per q tile, in the finalize.
# ----------------------------------------------------------------------------
def attn_kernel(q_ref, k_ref, v_ref, o_ref, qh_ref, m_ref, l_ref, acc_ref, *,
                heads_per_block, head_dim):
    ik = pl.program_id(3)
    n_kv = pl.num_programs(3)

    @pl.when(ik == 0)
    def _init():
        m_ref[...] = jnp.full_like(m_ref, -jnp.inf)
        l_ref[...] = jnp.zeros_like(l_ref)
        acc_ref[...] = jnp.zeros_like(acc_ref)
        # Unpack the lane-packed Q tile into per-head slabs once per q tile
        # (softmax scale is already folded into the projection weights).
        for g in range(heads_per_block):
            qh_ref[g] = q_ref[0, :, g * head_dim:(g + 1) * head_dim]

    for g in range(heads_per_block):
        lo, hi = g * head_dim, (g + 1) * head_dim
        q = qh_ref[g]                    # (tq, hd), compute dtype (bf16)
        k = k_ref[0, :, lo:hi]           # (tk, hd)
        v = v_ref[0, :, lo:hi]           # (tk, hd)

        # QK^T without materializing a transpose of K; f32 MXU accumulation.
        s = lax.dot_general(q, k, (((1,), (1,)), ((), ())),
                            preferred_element_type=jnp.float32)   # (tq, tk)

        m_prev = m_ref[g]                                          # (tq, 1)
        m_new = jnp.maximum(m_prev, jnp.max(s, axis=-1, keepdims=True))
        alpha = jnp.exp(m_prev - m_new)
        # exp in the compute dtype (bf16 EUP on v6e/v7x); l accumulated in f32.
        p = jnp.exp((s - m_new).astype(v.dtype))                   # (tq, tk)
        l_ref[g] = alpha * l_ref[g] + p.astype(jnp.float32).sum(
            axis=-1, keepdims=True)
        # PV in bf16 (MXU-native), f32 accumulate into the per-head acc slab.
        pv = jnp.dot(p, v, preferred_element_type=jnp.float32)
        acc_ref[g] = alpha * acc_ref[g] + pv
        m_ref[g] = m_new

    @pl.when(ik == n_kv - 1)
    def _finalize():
        # Touch the packed lane layout exactly once per q tile.
        for g in range(heads_per_block):
            lo, hi = g * head_dim, (g + 1) * head_dim
            inv_l = pl.reciprocal(l_ref[g], approx=True)           # EUP slot
            o_ref[0, :, lo:hi] = (acc_ref[g] * inv_l).astype(o_ref.dtype)


def flash_attention_packed(q, k, v, num_heads, *, out_dtype=None,
                           q_block=1024, kv_block=512, heads_per_block=None):
    B, S, H = q.shape
    hd = H // num_heads
    out_dtype = out_dtype or q.dtype

    # Head packing: G heads side by side in the lane dim. Default: largest
    # 128-lane-dense G up to 4 (amortizes grid-step overhead, larger K/V DMAs);
    # falls back to all heads (block width == H) when hd doesn't pack to 128.
    if heads_per_block is None:
        cands = [g for g in range(1, num_heads + 1)
                 if num_heads % g == 0 and (g * hd) % 128 == 0]
        if cands:
            small = [g for g in cands if g <= 4]
            G = max(small) if small else min(cands)
        else:
            G = num_heads
    else:
        if num_heads % heads_per_block:
            raise ValueError("heads_per_block must divide num_heads")
        G = heads_per_block
    ghd = G * hd
    n_groups = num_heads // G

    tq = _pick_tile(S, q_block)
    tk = _pick_tile(S, kv_block)
    # Keep the parallel grid extent >= 2 so both v7x TensorCores get work.
    while (B * n_groups * (S // tq) < 2 and tq % 16 == 0
           and S % (tq // 2) == 0):
        tq //= 2

    grid = (B, n_groups, S // tq, S // tk)

    q_spec = pl.BlockSpec((1, tq, ghd), lambda b, g, iq, ik: (b, iq, g))
    kv_spec = pl.BlockSpec((1, tk, ghd), lambda b, g, iq, ik: (b, ik, g))
    o_spec = pl.BlockSpec((1, tq, ghd), lambda b, g, iq, ik: (b, iq, g))

    qkv_item = jnp.dtype(q.dtype).itemsize
    out_item = jnp.dtype(out_dtype).itemsize
    cost = pl.CostEstimate(
        flops=4 * B * S * S * H,
        transcendentals=B * num_heads * S * S,
        bytes_accessed=(B * S * H * qkv_item * (1 + 2 * (S // tq))
                        + B * S * H * out_item))

    return pl.pallas_call(
        partial(attn_kernel, heads_per_block=G, head_dim=hd),
        out_shape=jax.ShapeDtypeStruct((B, S, H), out_dtype),
        grid_spec=pltpu.PrefetchScalarGridSpec(
            num_scalar_prefetch=0,
            grid=grid,
            in_specs=[q_spec, kv_spec, kv_spec],
            out_specs=o_spec,
            scratch_shapes=[
                pltpu.VMEM((G, tq, hd), q.dtype),      # per-head Q slabs
                pltpu.VMEM((G, tq, 1), jnp.float32),   # running max m
                pltpu.VMEM((G, tq, 1), jnp.float32),   # running sum l
                pltpu.VMEM((G, tq, hd), jnp.float32),  # per-head output acc
            ],
        ),
        compiler_params=pltpu.CompilerParams(
            dimension_semantics=("parallel", "parallel", "parallel",
                                 "arbitrary"),
            vmem_limit_bytes=_VMEM_LIMIT),
        cost_estimate=cost,
    )(q, k, v)


# ----------------------------------------------------------------------------
# Module-level wrapper: FlashRobertaSelfAttention.forward
# (self-attention path, no past_key_value, no cross-attention, no mask).
# w_qkv/b_qkv come from prepare_qkv_params (fused + scale-folded once at setup).
# ----------------------------------------------------------------------------
def flash_roberta_self_attention(hidden_states, w_qkv, b_qkv, num_heads, *,
                                 q_block=1024, kv_block=512, seq_block=512,
                                 heads_per_block=None):
    compute_dtype = w_qkv.dtype
    x = hidden_states.astype(compute_dtype)
    q, k, v = qkv_projection(x, w_qkv, b_qkv, seq_block=seq_block)
    # Attention reads head groups straight from (B, S, H) and writes (B, S, H):
    # no HBM-level head transposes anywhere.
    ctx = flash_attention_packed(q, k, v, num_heads,
                                 out_dtype=hidden_states.dtype,
                                 q_block=q_block, kv_block=kv_block,
                                 heads_per_block=heads_per_block)
    return (ctx,)


# ----------------------------------------------------------------------------
# Pure-JAX f32 reference for the correctness check.
# ----------------------------------------------------------------------------
def reference(hidden_states, params, num_heads):
    B, S, H = hidden_states.shape
    hd = H // num_heads
    q = hidden_states @ params["wq"] + params["bq"][0]
    k = hidden_states @ params["wk"] + params["bk"][0]
    v = hidden_states @ params["wv"] + params["bv"][0]
    qh = q.reshape(B, S, num_heads, hd).transpose(0, 2, 1, 3)
    kh = k.reshape(B, S, num_heads, hd).transpose(0, 2, 1, 3)
    vh = v.reshape(B, S, num_heads, hd).transpose(0, 2, 1, 3)
    s = jnp.einsum("bhqd,bhkd->bhqk", qh, kh) / math.sqrt(hd)
    p = jax.nn.softmax(s, axis=-1)
    o = jnp.einsum("bhqk,bhkd->bhqd", p, vh)
    return o.transpose(0, 2, 1, 3).reshape(B, S, H)


if __name__ == "__main__":
    # Small config consistent with the module: hidden=32, heads=2, seq=16, batch=2.
    # kv_block=8 -> 2 KV steps, so the online-softmax accumulation is exercised.
    B, S, H, NH = 2, 16, 32, 2

    key = jax.random.PRNGKey(0)
    ks = jax.random.split(key, 7)
    init = lambda k, shape: (0.02 * jax.random.normal(k, shape, jnp.float32))
    params = {
        "wq": init(ks[0], (H, H)), "wk": init(ks[1], (H, H)), "wv": init(ks[2], (H, H)),
        "bq": init(ks[3], (1, H)), "bk": init(ks[4], (1, H)), "bv": init(ks[5], (1, H)),
    }
    hidden_states = jax.random.normal(ks[6], (B, S, H), jnp.float32)

    # Parameter fusion / scale folding / bf16 cast happens once at setup time.
    w_qkv, b_qkv = prepare_qkv_params(params, NH, compute_dtype=jnp.bfloat16)

    (ctx,) = flash_roberta_self_attention(hidden_states, w_qkv, b_qkv, NH,
                                          kv_block=8)
    jax.block_until_ready(ctx)

    ref = reference(hidden_states, params, NH)
    assert ctx.shape == (B, S, H)
    max_err = float(jnp.max(jnp.abs(ctx.astype(jnp.float32) - ref)))
    # bf16 compute path -> bf16-level tolerance vs the f32 reference.
    assert jnp.allclose(ctx.astype(jnp.float32), ref, atol=1e-2, rtol=1e-2), (
        f"mismatch vs reference (max err {max_err})")
    print("KERNEL_OK")
</pallas_src>

<mosaic_0001>
module attributes {stable_mosaic.version = 11 : i64} {
  func.func @qkv_proj_kernel(%arg0: i32, %arg1: i32, %arg2: memref<1x16x32xbf16, #tpu.memory_space<vmem>>, %arg3: memref<32x96xbf16, #tpu.memory_space<vmem>>, %arg4: memref<1x96xf32, #tpu.memory_space<vmem>>, %arg5: memref<1x16x32xbf16, #tpu.memory_space<vmem>>, %arg6: memref<1x16x32xbf16, #tpu.memory_space<vmem>>, %arg7: memref<1x16x32xbf16, #tpu.memory_space<vmem>>) attributes {dimension_semantics = [#tpu.dimension_semantics<parallel>, #tpu.dimension_semantics<parallel>], iteration_bounds = array<i64: 2, 1>, scalar_prefetch = 0 : i64, scratch_operands = 0 : i64, tpu.core_type = #tpu.core_type<tc>, window_params = [{transform_indices = @transform_0, window_bounds = array<i64: 1, 16, 32>}, {pipeline_mode = #tpu.pipeline_mode<synchronous>, transform_indices = @transform_1, window_bounds = array<i64: 32, 96>}, {pipeline_mode = #tpu.pipeline_mode<synchronous>, transform_indices = @transform_2, window_bounds = array<i64: 1, 96>}, {transform_indices = @transform_3, window_bounds = array<i64: 1, 16, 32>}, {transform_indices = @transform_4, window_bounds = array<i64: 1, 16, 32>}, {transform_indices = @transform_5, window_bounds = array<i64: 1, 16, 32>}]} {
    %c0 = arith.constant 0 : index
    %c0_0 = arith.constant 0 : index
    %c0_1 = arith.constant 0 : index
    %0 = vector.load %arg2[%c0, %c0_0, %c0_1] : memref<1x16x32xbf16, #tpu.memory_space<vmem>>, vector<1x16x32xbf16>
    %1 = vector.shape_cast %0 : vector<1x16x32xbf16> to vector<16x32xbf16>
    %c0_2 = arith.constant 0 : index
    %c0_3 = arith.constant 0 : index
    %2 = vector.load %arg3[%c0_2, %c0_3] : memref<32x96xbf16, #tpu.memory_space<vmem>>, vector<32x96xbf16>
    %cst = arith.constant dense<0.000000e+00> : vector<16x96xf32>
    %3 = tpu.matmul %1, %2, %cst {dimension_numbers = #tpu.dot_dimension_numbers<[1], [0], [0], [1], [0, 0, 1, 1], [], []>} : vector<16x32xbf16>, vector<32x96xbf16>, vector<16x96xf32> -> vector<16x96xf32>
    %c0_4 = arith.constant 0 : index
    %c0_5 = arith.constant 0 : index
    %4 = vector.load %arg4[%c0_4, %c0_5] : memref<1x96xf32, #tpu.memory_space<vmem>>, vector<1x96xf32>
    %5 = vector.broadcast %4 : vector<1x96xf32> to vector<16x96xf32>
    %6 = arith.addf %3, %5 : vector<16x96xf32>
    %7 = vector.extract_strided_slice %6 {offsets = [0, 0], sizes = [16, 32], strides = [1, 1]} : vector<16x96xf32> to vector<16x32xf32>
    %8 = arith.truncf %7 : vector<16x32xf32> to vector<16x32xbf16>
    %c0_6 = arith.constant 0 : index
    %c0_7 = arith.constant 0 : index
    %c0_8 = arith.constant 0 : index
    %9 = vector.load %arg5[%c0_6, %c0_7, %c0_8] : memref<1x16x32xbf16, #tpu.memory_space<vmem>>, vector<1x16x32xbf16>
    %10 = vector.shape_cast %9 : vector<1x16x32xbf16> to vector<16x32xbf16>
    %11 = vector.shape_cast %8 : vector<16x32xbf16> to vector<1x16x32xbf16>
    tpu.vector_store %arg5[%c0_6, %c0_7, %c0_8], %11 {strides = array<i32>} : memref<1x16x32xbf16, #tpu.memory_space<vmem>>, vector<1x16x32xbf16>,
    %12 = vector.extract_strided_slice %6 {offsets = [0, 32], sizes = [16, 32], strides = [1, 1]} : vector<16x96xf32> to vector<16x32xf32>
    %13 = arith.truncf %12 : vector<16x32xf32> to vector<16x32xbf16>
    %c0_9 = arith.constant 0 : index
    %c0_10 = arith.constant 0 : index
    %c0_11 = arith.constant 0 : index
    %14 = vector.load %arg6[%c0_9, %c0_10, %c0_11] : memref<1x16x32xbf16, #tpu.memory_space<vmem>>, vector<1x16x32xbf16>
    %15 = vector.shape_cast %14 : vector<1x16x32xbf16> to vector<16x32xbf16>
    %16 = vector.shape_cast %13 : vector<16x32xbf16> to vector<1x16x32xbf16>
    tpu.vector_store %arg6[%c0_9, %c0_10, %c0_11], %16 {strides = array<i32>} : memref<1x16x32xbf16, #tpu.memory_space<vmem>>, vector<1x16x32xbf16>,
    %17 = vector.extract_strided_slice %6 {offsets = [0, 64], sizes = [16, 32], strides = [1, 1]} : vector<16x96xf32> to vector<16x32xf32>
    %18 = arith.truncf %17 : vector<16x32xf32> to vector<16x32xbf16>
    %c0_12 = arith.constant 0 : index
    %c0_13 = arith.constant 0 : index
    %c0_14 = arith.constant 0 : index
    %19 = vector.load %arg7[%c0_12, %c0_13, %c0_14] : memref<1x16x32xbf16, #tpu.memory_space<vmem>>, vector<1x16x32xbf16>
    %20 = vector.shape_cast %19 : vector<1x16x32xbf16> to vector<16x32xbf16>
    %21 = vector.shape_cast %18 : vector<16x32xbf16> to vector<1x16x32xbf16>
    tpu.vector_store %arg7[%c0_12, %c0_13, %c0_14], %21 {strides = array<i32>} : memref<1x16x32xbf16, #tpu.memory_space<vmem>>, vector<1x16x32xbf16>,
    return
  }
  func.func @transform_0(%arg0: i32, %arg1: i32) -> (i32, i32, i32) {
    %c0_i32 = arith.constant 0 : i32
    %c0_i32_0 = arith.constant 0 : i32
    return %arg0, %arg1, %c0_i32 : i32, i32, i32
  }
  func.func @transform_1(%arg0: i32, %arg1: i32) -> (i32, i32) {
    %c0_i32 = arith.constant 0 : i32
    %c0_i32_0 = arith.constant 0 : i32
    %c0_i32_1 = arith.constant 0 : i32
    return %c0_i32, %c0_i32_0 : i32, i32
  }
  func.func @transform_2(%arg0: i32, %arg1: i32) -> (i32, i32) {
    %c0_i32 = arith.constant 0 : i32
    %c0_i32_0 = arith.constant 0 : i32
    %c0_i32_1 = arith.constant 0 : i32
    return %c0_i32, %c0_i32_0 : i32, i32
  }
  func.func @transform_3(%arg0: i32, %arg1: i32) -> (i32, i32, i32) {
    %c0_i32 = arith.constant 0 : i32
    %c0_i32_0 = arith.constant 0 : i32
    return %arg0, %arg1, %c0_i32 : i32, i32, i32
  }
  func.func @transform_4(%arg0: i32, %arg1: i32) -> (i32, i32, i32) {
    %c0_i32 = arith.constant 0 : i32
    %c0_i32_0 = arith.constant 0 : i32
    return %arg0, %arg1, %c0_i32 : i32, i32, i32
  }
  func.func @transform_5(%arg0: i32, %arg1: i32) -> (i32, i32, i32) {
    %c0_i32 = arith.constant 0 : i32
    %c0_i32_0 = arith.constant 0 : i32
    return %arg0, %arg1, %c0_i32 : i32, i32, i32
  }
}

</mosaic_0001>

<bundles_post_ra>
// kernel: tpu_custom_call.1
= control target key start
LH: loop header
LB: loop body
LE: loop exit
PB: predicated region body
PF: predicated region fallthrough
CT: control target
= control target key end

     0   :  { %11 = vsyncpa [#allocation3], 0  ;;  %s1340_s0 = inlined_call_operand.hbm [shape: bf16[2,16,32], index: 0, kind: input, shape index: {}]   ;;  %s1341_s1 = inlined_call_operand.hbm [shape: bf16[32,96], index: 1, kind: input, shape index: {}]   ;;  %s1342_s2 = inlined_call_operand.vmem [shape: f32[1,96], index: 2, kind: input, shape index: {}]   ;;  %s1343_s3 = inlined_call_operand.hbm [shape: bf16[2,16,32], index: 3, kind: output, shape index: {0}]   ;;  %s1344_s4 = inlined_call_operand.hbm [shape: bf16[2,16,32], index: 4, kind: output, shape index: {1}]   ;;  %s1345_s5 = inlined_call_operand.hbm [shape: bf16[2,16,32], index: 5, kind: output, shape index: {2}]  }
   0x1   :  { %13 = vsyncpa [#allocation3 + $0x1], 0 }
   0x2   :  { %14 = vsyncpa [#allocation6], 0 }
   0x3   :  { %15 = vsyncpa [#allocation4], 0 }
   0x4   :  { %17 = vsyncpa [#allocation4 + $0x1], 0 }
   0x5   :  { %18 = vsyncpa [#allocation9], 0 }
   0x6   :  { %20 = vsyncpa [#allocation9 + $0x1], 0  ;;  %s1021_s18 = smov 0   ;;  %s1023_s19 = smov 0  }
   0x7   :  { %s1025_s20 = smov 0   ;;  %s1027_s21 = smov 0  }
   0x8   :  { %s1029_s22 = smov 0   ;;  %s1031_s23 = smov 0  }
   0x9 LB: > { %s1052_s24 = sadd.s32 4294967295, %s977_s23   ;;  %s1349_s25 = sadd.s32 4294967294, %s977_s23   ;;  %s977_s23 = sphi %s1031_s23, %s26_s23   ;;  %s973_s22 = sphi %s1029_s22, %s1376_s22   ;;  %s969_s21 = sphi %s1027_s21, %s1375_s21   ;;  %s965_s20 = sphi %s1025_s20, %s1374_s20   ;;  %s961_s19 = sphi %s1023_s19, %s1373_s19   ;;  %s957_s18 = sphi %s1021_s18, %s1372_s18  }
   0xa   : > { %p60_p0 = scmp.ne.s32.totalorder %s961_s19, %s957_s18  ;;  %p1346_p1 = scmp.eq.s32.totalorder %s1052_s24, 0 }
   0xb   : > { %p134_p3 = scmp.eq.s32.totalorder %s1349_s25, 1  ;;  %p633_p5 = scmp.ge.s32.totalorder %s977_s23, 1 }
   0xc   : > { %p1063_p4 = por %p1346_p1, %p60_p0  ;;  %p197_p7 = scmp.lt.s32.totalorder %s977_s23, 3 }
   0xd   : > { %p1068_p6 = por %p134_p3, %p60_p0  ;;  %s979_s29 = smov [#allocation5]  }
   0xe   : > { %s1354_s26 = scalar_select %p1063_p4, 1, 0 }
   0xf   : > { %s1355_s27 = scalar_select %p1068_p6, 1, 0 }
  0x10   : > { %p1073_p8 = pnand %p633_p5, %p197_p7  ;;  %s209_s30 = sshll.u32 %s979_s29, 4  ;;  %s210_s30 = int_to_ptr.vmem [resolvable:$true] %s209_s30 }
  0x11   : > { %s38_s7 = sadd.s32 1, %s973_s22  ;;  %s773_s10 = scalar_lea.hbm %s1341_s1, 256 }
  0x12   : > { %s1356_s28 = scalar_select %p1073_p8, 1, 0 }
  0x13   : > { %p692_p9 = pneg %p1073_p8  ;;  %p774_p12 = scmp.ne.s32.totalorder %s1341_s1, %s773_s10 }
  0x14   : > { %p780_p5 = scmp.lt.u32.totalorder %s773_s10, %s1341_s1 }
  0x15   : > { %p1082_p11 = pnand %p692_p9, %p1346_p1 }
  0x17   : > { %p775_p13 = pneg %p1082_p11 }
  0x19   : > { %p776_p0 = pnand %p775_p13, %p774_p12 }
  0x1b   : > { %p777_p3 = pneg %p776_p0 }
  0x1d   : > { %p782_p7 = pnand %p780_p5, %p777_p3 }
  0x1f   : > { %785 = shalt.err (!%p782_p7)
}
  0x20   : > { %s786_s15 = scalar_lea.vmem %s210_s30, 256  ;;  %p794_p2 = scmp.lt.s32.totalorder %s210_s30, %s210_s30 }
  0x21   : > { %p787_p9 = scmp.ne.s32.totalorder %s210_s30, %s786_s15  ;;  %p795_p6 = scmp.lt.s32.totalorder %s786_s15, %s786_s15 }
  0x23   : > { %p789_p10 = pnand %p787_p9, %p775_p13  ;;  %p796_p4 = por %p795_p6, %p794_p2 }
  0x25   : > { %p790_p1 = pneg %p789_p10 }
  0x27   : > { %p797_p8 = pnand %p796_p4, %p790_p1 }
  0x29   : > { %800 = shalt.err (!%p797_p8)
}
  0x2a   : > { %s1350_s16 = smov 64   ;;  %s981_s17 = smov 4  }
  0x2b   : > { %695 = dma.hbm_to_vmem [thread:$0]  (!%p1082_p11), %s1341_s1, 256, %s210_s30, [#allocation6], %s1350_s16, %s1350_s16, %s981_s17  }
  0x2c   : > { %p40_p1 = scmp.ge.s32.totalorder %s38_s7, 2  ;;  %s47_s9 = sadd.s32 1, %s965_s20 }
  0x2d   : > { %p54_p2 = scmp.ne.s32.totalorder %s965_s20, %s961_s19  ;;  %p55_p4 = scmp.eq.s32.totalorder %s977_s23, 0 }
  0x2e   : > { %s1378_s7 = smov (%p40_p1, %s38_s7), 0  ;;  %p1359_p8 = scmp.eq.s32.totalorder %s1052_s24, 1 }
  0x2f   : > { %p1112_p6 = por %p55_p4, %p54_p2  ;;  %s42_s11 = ssub.s32 %s973_s22, %s1378_s7 }
  0x30   : > { %p1118_p10 = por %p1359_p8, %p54_p2  ;;  %p711_p12 = scmp.lt.s32.totalorder %s977_s23, 2 }
  0x31   : > { %p45_p11 = scmp.eq.s32.totalorder %s42_s11, 0  ;;  %s226_s30 = sand.u32 1, %s965_s20  }
  0x32   : > { %s636_s12 = sshll.u32 %s226_s30, 3  ;;  %s663_s14 = sshll.u32 %s973_s22, 7 }
  0x33   : > { %s1127_s13 = scalar_select %p45_p11, %s965_s20, %s47_s9  }
  0x34   : > { %s1133_s8 = scalar_lea.hbm %s1340_s0, %s663_s14  ;;  %s230_s25 = scalar_lea.vmem [#allocation2], %s636_s12 }
  0x35   : > { %s239_s16 = sshll.u32 %s230_s25, 4  ;;  %p1139_p13 = pnand %p711_p12, %p1112_p6  ;;  %s1135_s16 = int_to_ptr.vmem [resolvable:$true] %s239_s16 }
  0x36   : > { %s1143_s9 = scalar_lea.sflag [#allocation3], %s226_s30  ;;  %s801_s15 = scalar_lea.hbm %s1133_s8, 128 }
  0x37   : > { %p802_p0 = scmp.ne.s32.totalorder %s1133_s8, %s801_s15  ;;  %p803_p3 = pneg %p1139_p13 }
  0x38   : > { %s806_s10 = scalar_lea.hbm %s1340_s0, 256  ;;  %p807_p9 = scmp.lt.u32.totalorder %s1133_s8, %s1340_s0 }
  0x39   : > { %p804_p5 = pnand %p803_p3, %p802_p0  ;;  %p808_p1 = scmp.lt.u32.totalorder %s806_s10, %s801_s15 }
  0x3a   : > { %p810_p4 = scmp.lt.u32.totalorder %s801_s15, %s1133_s8 }
  0x3b   : > { %p805_p7 = pneg %p804_p5  ;;  %p809_p2 = por %p808_p1, %p807_p9 }
  0x3d   : > { %p811_p6 = por %p810_p4, %p809_p2 }
  0x3f   : > { %p812_p8 = pnand %p811_p6, %p805_p7 }
  0x41   : > { %815 = shalt.err (!%p812_p8)
}
  0x42   : > { %s816_s30 = scalar_lea.vmem %s1135_s16, 128  ;;  %s982_s25 = smov [#allocation2]  }
  0x43   : > { %p817_p12 = scmp.ne.s32.totalorder %s1135_s16, %s816_s30  ;;  %s821_s12 = sshll.u32 %s982_s25, 4  ;;  %s822_s12 = int_to_ptr.vmem [resolvable:$false] %s821_s12 }
  0x44   : > { %s823_s14 = scalar_lea.vmem %s822_s12, 256  ;;  %p824_p5 = scmp.lt.s32.totalorder %s1135_s16, %s822_s12 }
  0x45   : > { %p819_p11 = pnand %p817_p12, %p803_p3  ;;  %p825_p9 = scmp.lt.s32.totalorder %s823_s14, %s816_s30 }
  0x47   : > { %p820_p0 = pneg %p819_p11  ;;  %p826_p1 = por %p825_p9, %p824_p5 }
  0x49   : > { %p827_p2 = pnand %p826_p1, %p820_p0 }
  0x4b   : > { %830 = shalt.err (!%p827_p2)
}
  0x4c   : > { %s1362_s15 = smov 64   ;;  %p1363_p3 = scmp.ne.s32.totalorder %s1356_s28, 0 }
  0x4d   : > { %699 = dma.hbm_to_vmem [thread:$0]  (!%p1139_p13), %s1133_s8, 128, %s1135_s16, %s1143_s9, %s1362_s15, %s1362_s15, %s981_s17  }
  0x4e   : > { %251 = sbr.rel (%p1363_p3) target bundleno = 483 (0x1e3), region = 32  ;;  %s1177_s10 = sand.u32 (!%p1363_p3), 1, %s961_s19  }
  0x4f   : > { %s1180_s29 = sshll.u32 (!%p1363_p3), %s1177_s10, 3  ;;  %s254_s11 = scalar_lea.sflag (!%p1363_p3), [#allocation3], %s1177_s10 }
  0x50   : > { %s257_s30 = scalar_lea.vmem (!%p1363_p3), [#allocation2], %s1180_s29  ;;  %p1364_p7 = scmp.ne.s32.totalorder (!%p1363_p3), %s1354_s26, 0 }
  0x55   : > { %940 = dma.done.wait (%p1364_p7), %s254_s11, 128  }
  0x56   : > { %942 = vsyncadd (%p1364_p7), %s254_s11, 4294967168  ;;  %p1365_p13 = scmp.eq.s32.totalorder %s1052_s24, 0 }
  0x58   : > { %944 = dma.done.wait (%p1365_p13), [#allocation6], 256   ;;  %p1366_p4 = pmov %p1365_p13 }
  0x59   : > { %v983_v0 = vmov 0.0   ;;  %vm984_vm0 = vmmov 0   ;;  %v770_v1 = vld [vmem:[#allocation5] sm:$0xff]   ;;  %v771_v2 = vld [vmem:[#allocation5 + $0x8] sm:$0xff]   ;;  %v772_v3 = vld [vmem:[%s257_s30] sm:$0xff]   ;;  %vm333_vm1 = vcmask 261120  }
  0x5a   : > { %946 = vsyncadd (%p1366_p4), [#allocation6], 4294967040  ;;  %672 = vmatprep.subr.bf16.mxu0 %v983_v0  ;;  %676 = vmatprep.mubr.msk.bf16.mxu0 %vm984_vm0, %v983_v0  ;;  %v645_v4 = vld [vmem:[%s1342_s2] ss:$0 sm:$0xff]  ;;  %vm386_vm2 = vcmask 257024   ;;  %s283_s16 = scalar_lea.vmem [#allocation7], %s1180_s29 }
  0x5b   : > { %673 = vmatpush3.bf16.msra.mxu0 %v770_v1  ;;  %s431_s17 = sshll.u32 %s283_s16, 4  ;;  %s1197_s8 = sshll.u32 %s969_s21, 7  ;;  %s1208_s17 = int_to_ptr.vmem [resolvable:$true] %s431_s17 }
  0x5c   : > { %674 = vmatprep.subr.bf16.mxu0 %v983_v0  ;;  %s1352_s9 = smov 64   ;;  %s1351_s25 = smov 96  }
  0x5d   : > { %s1206_s15 = scalar_lea.hbm %s1343_s3, %s1197_s8  ;;  %s406_s21 = scalar_lea.sflag [#allocation4], %s1177_s10 }
  0x5e   : > { %s831_s11 = scalar_lea.vmem %s1208_s17, 128  ;;  %s987_s30 = smov [#allocation7]  }
  0x5f   : > { %675 = vmatpush3.bf16.msra.mxu0 %v771_v2  ;;  %p832_p6 = scmp.ne.s32.totalorder %s1208_s17, %s831_s11  ;;  %s835_s26 = sshll.u32 %s987_s30, 4  ;;  %s836_s26 = int_to_ptr.vmem [resolvable:$false] %s835_s26 }
  0x60   : > { %s837_s28 = scalar_lea.vmem %s836_s26, 256  ;;  %p838_p11 = scmp.lt.s32.totalorder %s1208_s17, %s836_s26 }
  0x61   : > { %p833_p8 = pnand %p832_p6, %p1118_p10  ;;  %p839_p0 = scmp.lt.s32.totalorder %s837_s28, %s831_s11 }
  0x62   : > { %677 = vmatmul.mubr.msk.bf16.vlgmr.msra.gmra.mrb[0].mxu0 %vm333_vm1, %v772_v3 }
  0x63   : > { %p834_p12 = pneg %p833_p8  ;;  %p840_p5 = por %p839_p0, %p838_p11 }
  0x65   : > { %p841_p9 = pnand %p840_p5, %p834_p12 }
 0x135   : > { %v371_v5 = vpop.f32.mrb[0].mxu0 }
 0x136   : > { %v372_v6 = vadd.f32 %v645_v4, %v371_v5  ;;  %v678_v7 = vpop.f32.mrb[1].mxu0 }
 0x137   : > { %v374_v8 = vpop.f32.mrb[2].mxu0 }
 0x138   : > { %v664_v9 = vpack.c.bf16 %v372_v6, %v372_v6  ;;  %v375_v10 = vadd.f32 %v645_v4, %v374_v8  ;;  %v679_v11 = vpop.f32.mrb[3].mxu0 }
 0x13a   : > { %387 = vst.msk [vmem:[%s283_s16] sm:$0xf] %vm386_vm2, %v664_v9  ;;  %v665_v12 = vpack.c.bf16 %v375_v10, %v375_v10  ;;  %397 = vrot.lane.b32.xlu1 %v664_v9, %s1352_s9  ;;  %389 = vrot.lane.b32.xlu0 %v664_v9, %s1351_s25 }
 0x13c   : > { %388 = vst.msk [vmem:[%s283_s16 + $0x4] sm:$0xf] %vm386_vm2, %v665_v12 }
 0x13d   : > { %844 = shalt.err (!%p841_p9)
}
 0x13e   : > { %s845_s16 = scalar_lea.hbm %s1206_s15, 128  ;;  %s849_s30 = scalar_lea.hbm %s1343_s3, 256 }
 0x13f   : > { %p846_p1 = scmp.ne.s32.totalorder %s1206_s15, %s845_s16  ;;  %p850_p7 = scmp.lt.u32.totalorder %s1206_s15, %s1343_s3 }
 0x140   : > { %p851_p13 = scmp.lt.u32.totalorder %s849_s30, %s845_s16  ;;  %p853_p6 = scmp.lt.u32.totalorder %s845_s16, %s1206_s15 }
 0x141   : > { %p847_p2 = pnand %p846_p1, %p1118_p10 }
 0x142   : > { %p852_p4 = por %p851_p13, %p850_p7 }
 0x143   : > { %p848_p3 = pneg %p847_p2 }
 0x144   : > { %p854_p8 = por %p853_p6, %p852_p4 }
 0x146   : > { %p855_p12 = pnand %p854_p8, %p848_p3 }
 0x148   : > { %858 = shalt.err (!%p855_p12)
}
 0x149   : > { %s988_s11 = smov 4   ;;  %399 = vrot.lane.b32.xlu1 %v665_v12, %s1352_s9  ;;  %s1367_s25 = smov 96  }
 0x14a   : > { %686 = dma.vmem_to_hbm [thread:$0]  (%p1118_p10), %s1208_s17, 128, %s1206_s15, %s406_s21, %s1352_s9, %s1352_s9, %s988_s11  }
 0x14b   : > { %391 = vrot.lane.b32.xlu0 %v665_v12, %s1367_s25  ;;  %s290_s28 = scalar_lea.vmem [#allocation8], %s1180_s29  ;;  %s410_s12 = sand.u32 1, %s1052_s24  }
 0x14c   : > { %s449_s16 = sshll.u32 %s290_s28, 4  ;;  %s297_s14 = scalar_lea.vmem [#allocation10], %s1180_s29  ;;  %s1245_s16 = int_to_ptr.vmem [resolvable:$true] %s449_s16 }
 0x14d   : > { %s467_s10 = sshll.u32 %s297_s14, 4  ;;  %s1251_s21 = scalar_lea.hbm %s1344_s4, %s1197_s8  ;;  %s1253_s10 = int_to_ptr.vmem [resolvable:$true] %s467_s10 }
 0x14e   : > { %s1259_s30 = scalar_lea.hbm %s1345_s5, %s1197_s8  ;;  %s1263_s26 = scalar_lea.sflag [#allocation9], %s410_s12 }
 0x14f   : > { %s859_s25 = scalar_lea.vmem %s1245_s16, 128  ;;  %s989_s17 = smov [#allocation8]  }
 0x150   : > { %p860_p11 = scmp.ne.s32.totalorder %s1245_s16, %s859_s25  ;;  %s863_s15 = sshll.u32 %s989_s17, 4  ;;  %s864_s15 = int_to_ptr.vmem [resolvable:$false] %s863_s15 }
 0x151   : > { %s865_s9 = scalar_lea.vmem %s864_s15, 256  ;;  %p866_p9 = scmp.lt.s32.totalorder %s1245_s16, %s864_s15 }
 0x152   : > { %p861_p0 = pnand %p860_p11, %p1118_p10  ;;  %p867_p1 = scmp.lt.s32.totalorder %s865_s9, %s859_s25 }
 0x154   : > { %p862_p5 = pneg %p861_p0  ;;  %p868_p2 = por %p867_p1, %p866_p9 }
 0x156   : > { %p869_p3 = pnand %p868_p2, %p862_p5 }
 0x1ac   : > { %v398_v13 = vpop.permute.xlu1 %397  ;;  %v390_v14 = vpop.permute.xlu0 %389 }
 0x1ad   : > { %403 = vst.msk [vmem:[%s297_s14] sm:$0xf] %vm386_vm2, %v398_v13  ;;  %395 = vst.msk [vmem:[%s290_s28] sm:$0xf] %vm386_vm2, %v390_v14 }
 0x1bb   : > { %v400_v15 = vpop.permute.xlu1 %399 }
 0x1bc   : > { %404 = vst.msk [vmem:[%s297_s14 + $0x4] sm:$0xf] %vm386_vm2, %v400_v15 }
 0x1bd   : > { %v392_v16 = vpop.permute.xlu0 %391 }
 0x1be   : > { %396 = vst.msk [vmem:[%s290_s28 + $0x4] sm:$0xf] %vm386_vm2, %v392_v16 }
 0x1bf   : > { %872 = shalt.err (!%p869_p3)
}
 0x1c0   : > { %s873_s8 = scalar_lea.hbm %s1251_s21, 128  ;;  %s877_s14 = scalar_lea.hbm %s1344_s4, 256 }
 0x1c1   : > { %p874_p7 = scmp.ne.s32.totalorder %s1251_s21, %s873_s8  ;;  %p878_p6 = scmp.lt.u32.totalorder %s1251_s21, %s1344_s4 }
 0x1c2   : > { %p879_p8 = scmp.lt.u32.totalorder %s877_s14, %s873_s8  ;;  %p881_p11 = scmp.lt.u32.totalorder %s873_s8, %s1251_s21 }
 0x1c3   : > { %p875_p13 = pnand %p874_p7, %p1118_p10 }
 0x1c4   : > { %p880_p12 = por %p879_p8, %p878_p6 }
 0x1c5   : > { %p876_p4 = pneg %p875_p13 }
 0x1c6   : > { %p882_p0 = por %p881_p11, %p880_p12 }
 0x1c8   : > { %p883_p5 = pnand %p882_p0, %p876_p4 }
 0x1ca   : > { %886 = shalt.err (!%p883_p5)
}
 0x1cb   : > { %s1368_s9 = smov 64   ;;  %s887_s25 = scalar_lea.vmem %s1253_s10, 128 }
 0x1cc   : > { %687 = dma.vmem_to_hbm [thread:$0]  (%p1118_p10), %s1245_s16, 128, %s1251_s21, %s1263_s26, %s1368_s9, %s1368_s9, %s988_s11  }
 0x1cd   : > { %p888_p9 = scmp.ne.s32.totalorder %s1253_s10, %s887_s25  ;;  %s990_s17 = smov [#allocation10]  }
 0x1ce   : > { %s891_s15 = sshll.u32 %s990_s17, 4  ;;  %s892_s15 = int_to_ptr.vmem [resolvable:$false] %s891_s15 }
 0x1cf   : > { %p889_p1 = pnand %p888_p9, %p1118_p10  ;;  %s893_s8 = scalar_lea.vmem %s892_s15, 256 }
 0x1d0   : > { %p894_p3 = scmp.lt.s32.totalorder %s1253_s10, %s892_s15  ;;  %p895_p7 = scmp.lt.s32.totalorder %s893_s8, %s887_s25 }
 0x1d1   : > { %p890_p2 = pneg %p889_p1 }
 0x1d2   : > { %p896_p13 = por %p895_p7, %p894_p3 }
 0x1d4   : > { %p897_p4 = pnand %p896_p13, %p890_p2 }
 0x1d6   : > { %900 = shalt.err (!%p897_p4)
}
 0x1d7   : > { %s901_s16 = scalar_lea.hbm %s1259_s30, 128  ;;  %s905_s12 = scalar_lea.hbm %s1345_s5, 256 }
 0x1d8   : > { %p902_p6 = scmp.ne.s32.totalorder %s1259_s30, %s901_s16  ;;  %p906_p11 = scmp.lt.u32.totalorder %s1259_s30, %s1345_s5 }
 0x1d9   : > { %p907_p0 = scmp.lt.u32.totalorder %s905_s12, %s901_s16  ;;  %p909_p9 = scmp.lt.u32.totalorder %s901_s16, %s1259_s30 }
 0x1da   : > { %p903_p8 = pnand %p902_p6, %p1118_p10 }
 0x1db   : > { %p908_p5 = por %p907_p0, %p906_p11 }
 0x1dc   : > { %p904_p12 = pneg %p903_p8 }
 0x1dd   : > { %p910_p1 = por %p909_p9, %p908_p5 }
 0x1df   : > { %p911_p2 = pnand %p910_p1, %p904_p12 }
 0x1e1   : > { %914 = shalt.err (!%p911_p2)
}
 0x1e2   : > { %688 = dma.vmem_to_hbm [thread:$0]  (%p1118_p10), %s1253_s10, 128, %s1259_s30, %s1263_s26, %s1368_s9, %s1368_s9, %s988_s11  }
 0x1e3 PF: > { %s482_s29 = sand.u32 1, %s957_s18   ;;  %p1369_p3 = scmp.ne.s32.totalorder %s1355_s27, 0 }
 0x1e4   : > { %p1370_p7 = scmp.ge.s32.totalorder %s977_s23, 2  ;;  %s483_s25 = scalar_lea.sflag [#allocation4], %s482_s29 }
 0x1e6   : > { %p701_p13 = pnand %p1370_p7, %p1369_p3 }
 0x1e8   : > { %948 = dma.done.wait (!%p701_p13), %s483_s25, 128  }
 0x1e9   : > { %950 = vsyncadd (!%p701_p13), %s483_s25, 4294967168  ;;  %s1371_s6 = sadd.s32 4294967294, %s977_s23  }
 0x1ea   : > { %s491_s17 = sand.u32 1, %s1371_s6  }
 0x1eb   : > { %s492_s15 = scalar_lea.sflag [#allocation9], %s491_s17 }
 0x1ec   : > { %952 = dma.done.wait (!%p701_p13), %s492_s15, 256  }
 0x1ed   : > { %954 = vsyncadd (!%p701_p13), %s492_s15, 4294967040  ;;  %s26_s23 = sadd.s32 1, %s977_s23   ;;  %s1372_s18 = smov %s961_s19 }
 0x1ee   : > { %p23_p10 = scmp.ge.s32.totalorder %s26_s23, 4   ;;  %s1373_s19 = smov %s965_s20 }
 0x1ef   : > { %s1374_s20 = smov %s1127_s13  ;;  %s1375_s21 = smov %s973_s22 }
 0x1f0   : > { %s1376_s22 = smov %s1378_s7  ;;  %25 = sbr.rel (!%p23_p10) target bundleno = 9 (0x9), region = 113 }
 0x1f7   :  { %506 = vsyncpa [#allocation3], 1 }
 0x1f8   :  { %508 = vsyncpa [#allocation3 + $0x1], 1 }
 0x1f9   :  { %509 = vsyncpa [#allocation6], 1 }
 0x1fa   :  { %510 = vsyncpa [#allocation4], 1 }
 0x1fb   :  { %512 = vsyncpa [#allocation4 + $0x1], 1 }
 0x1fc   :  { %513 = vsyncpa [#allocation9], 1 }
 0x1fd   :  { %515 = vsyncpa [#allocation9 + $0x1], 1 }

</bundles_post_ra>
